<compile_context>
chip_gen: v7x
topology: tpu7x:2x2x1
jax: 0.10.0
libtpu: 0.0.40
codegen_flags: <defaults>
</compile_context>

<pallas_src>
import functools

import jax
import jax.numpy as jnp
from jax.experimental import pallas as pl
from jax.experimental.pallas import tpu as pltpu


def rnn_kernel(x_ref, w_ih_ref, w_hh_ref, b_ref, w_out_ref, b_out_ref, out_ref):
    # Static shapes (trace-time).
    SB, D = x_ref.shape            # (S * B_pad, D)
    H = w_hh_ref.shape[0]
    Bp = out_ref.shape[0]          # padded batch (sublane multiple of 8)
    S = SB // Bp

    # --- Hoisted input projection: one MXU matmul for all timesteps + single bias broadcast ---
    xw = (jnp.dot(x_ref[...], w_ih_ref[...], preferred_element_type=jnp.float32)
          + b_ref[...])            # (S*Bp, H)

    w_hh = w_hh_ref[...]

    # --- Recurrence: static unrolled time loop (S=8), single dot + tanh per step.
    #     xw slices are static and sublane-aligned (Bp % 8 == 0) -> copy-free.
    h = jnp.zeros((Bp, H), jnp.float32)
    for t in range(S):
        h = jnp.tanh(xw[t * Bp:(t + 1) * Bp, :]
                     + jnp.dot(h, w_hh, preferred_element_type=jnp.float32))

    # --- Head: linear + log-softmax over lane-padded classes (padded lanes bias -1e30) ---
    logits = (jnp.dot(h, w_out_ref[...], preferred_element_type=jnp.float32)
              + b_out_ref[...])    # (Bp, 128)
    m = jnp.max(logits, axis=1, keepdims=True)
    shifted = logits - m
    lse = jnp.log(jnp.sum(jnp.exp(shifted), axis=1, keepdims=True))
    out_ref[...] = shifted - lse


def make_rnn_params(w_ih, w_hh, b_ih, b_hh, w_out, b_out):
    """One-time (init-time) preprocessing of the weights — NOT on the per-call path."""
    H = w_hh.shape[0]
    C = w_out.shape[1]
    Cp = 128  # lane-dense output block

    # Combined recurrent bias, broadcast once inside the kernel.
    b = (b_ih + b_hh).reshape(1, H).astype(jnp.float32)

    # Lane-pad the head: zero weight columns, -1e30 bias on padded classes
    # -> exp() contributes exactly 0, so log-softmax over the real C classes is exact.
    w_out_p = jnp.zeros((H, Cp), jnp.float32).at[:, :C].set(w_out.astype(jnp.float32))
    b_out_p = jnp.full((1, Cp), -1e30, jnp.float32).at[0, :C].set(b_out.astype(jnp.float32))

    params = {
        "w_ih": w_ih.astype(jnp.float32),
        "w_hh": w_hh.astype(jnp.float32),
        "b": b,
        "w_out": w_out_p,
        "b_out": b_out_p,
    }
    # Materialize once so no per-call lazy work remains.
    params = jax.tree_util.tree_map(jax.block_until_ready, params)
    return params, C


@functools.partial(jax.jit, static_argnames=("num_classes",))
def _rnn_forward_jit(x, w_ih, w_hh, b, w_out_p, b_out_p, *, num_classes):
    """Single compiled unit: x pad + reshape + Pallas kernel + output slice."""
    S, B, D = x.shape
    Bp = max(8, ((B + 7) // 8) * 8)   # sublane-pad batch
    Cp = b_out_p.shape[1]

    # Zero-pad batch rows (their results are sliced away) and flatten time into sublanes.
    x_p = jnp.zeros((S, Bp, D), jnp.float32).at[:, :B, :].set(x.astype(jnp.float32))
    x_flat = x_p.reshape(S * Bp, D)

    vmem = pl.BlockSpec(memory_space=pltpu.MemorySpace.VMEM)

    out_p = pl.pallas_call(
        rnn_kernel,
        out_shape=jax.ShapeDtypeStruct((Bp, Cp), jnp.float32),
        in_specs=[vmem] * 6,          # whole arrays DMA'd to VMEM exactly once
        out_specs=vmem,
    )(x_flat, w_ih, w_hh, b, w_out_p, b_out_p)

    return out_p[:B, :num_classes]


def rnn_forward(params, num_classes, x):
    """x: (seq, batch, input_dim). Returns (batch, num_classes) log-probs."""
    return _rnn_forward_jit(x, params["w_ih"], params["w_hh"], params["b"],
                            params["w_out"], params["b_out"], num_classes=num_classes)


def reference_forward(x, w_ih, w_hh, b_ih, b_hh, w_out, b_out):
    """Pure-JAX reference mirroring the PyTorch module semantics."""
    S, B, D = x.shape
    H = w_hh.shape[0]
    h = jnp.zeros((B, H), jnp.float32)
    for t in range(S):
        h = jnp.tanh(x[t] @ w_ih + h @ w_hh + b_ih + b_hh)
    logits = h @ w_out + b_out
    return jax.nn.log_softmax(logits, axis=1)


if __name__ == "__main__":
    key = jax.random.PRNGKey(0)
    S, B, D, H, C = 8, 2, 16, 32, 5

    ks = jax.random.split(key, 7)
    # PyTorch-style uniform(-1/sqrt(h), 1/sqrt(h)) init, done deterministically here.
    bound = 1.0 / jnp.sqrt(jnp.float32(H))
    x     = jax.random.normal(ks[0], (S, B, D), jnp.float32)
    w_ih  = jax.random.uniform(ks[1], (D, H), jnp.float32, -bound, bound)  # = weight_ih_l0.T
    w_hh  = jax.random.uniform(ks[2], (H, H), jnp.float32, -bound, bound)  # = weight_hh_l0.T
    b_ih  = jax.random.uniform(ks[3], (H,),   jnp.float32, -bound, bound)
    b_hh  = jax.random.uniform(ks[4], (H,),   jnp.float32, -bound, bound)
    w_out = jax.random.uniform(ks[5], (H, C), jnp.float32, -bound, bound)  # = W.weight.T
    b_out = jax.random.uniform(ks[6], (C,),   jnp.float32, -bound, bound)

    # One-time init-time preprocessing (hoisted out of the per-call path).
    params, num_classes = make_rnn_params(w_ih, w_hh, b_ih, b_hh, w_out, b_out)

    out = rnn_forward(params, num_classes, x)
    out = jax.block_until_ready(out)

    ref = reference_forward(x, w_ih, w_hh, b_ih, b_hh, w_out, b_out)
    assert out.shape == (B, C)
    assert jnp.allclose(out, ref, atol=1e-5, rtol=1e-5), (out, ref)
    print("KERNEL_OK")
</pallas_src>

<mosaic_0001>
module attributes {stable_mosaic.version = 11 : i64} {
  func.func @rnn_kernel(%arg0: memref<64x16xf32, #tpu.memory_space<vmem>>, %arg1: memref<16x32xf32, #tpu.memory_space<vmem>>, %arg2: memref<32x32xf32, #tpu.memory_space<vmem>>, %arg3: memref<1x32xf32, #tpu.memory_space<vmem>>, %arg4: memref<32x128xf32, #tpu.memory_space<vmem>>, %arg5: memref<1x128xf32, #tpu.memory_space<vmem>>, %arg6: memref<8x128xf32, #tpu.memory_space<vmem>>) attributes {dimension_semantics = [], scalar_prefetch = 0 : i64, scratch_operands = 0 : i64, tpu.core_type = #tpu.core_type<tc>} {
    %c0 = arith.constant 0 : index
    %c0_0 = arith.constant 0 : index
    %0 = vector.load %arg0[%c0, %c0_0] : memref<64x16xf32, #tpu.memory_space<vmem>>, vector<64x16xf32>
    %c0_1 = arith.constant 0 : index
    %c0_2 = arith.constant 0 : index
    %1 = vector.load %arg1[%c0_1, %c0_2] : memref<16x32xf32, #tpu.memory_space<vmem>>, vector<16x32xf32>
    %cst = arith.constant dense<0.000000e+00> : vector<64x32xf32>
    %2 = tpu.matmul %0, %1, %cst {dimension_numbers = #tpu.dot_dimension_numbers<[1], [0], [0], [1], [0, 0, 1, 1], [], []>} : vector<64x16xf32>, vector<16x32xf32>, vector<64x32xf32> -> vector<64x32xf32>
    %c0_3 = arith.constant 0 : index
    %c0_4 = arith.constant 0 : index
    %3 = vector.load %arg3[%c0_3, %c0_4] : memref<1x32xf32, #tpu.memory_space<vmem>>, vector<1x32xf32>
    %4 = vector.broadcast %3 : vector<1x32xf32> to vector<64x32xf32>
    %5 = arith.addf %2, %4 : vector<64x32xf32>
    %c0_5 = arith.constant 0 : index
    %c0_6 = arith.constant 0 : index
    %6 = vector.load %arg2[%c0_5, %c0_6] : memref<32x32xf32, #tpu.memory_space<vmem>>, vector<32x32xf32>
    %cst_7 = arith.constant 0.000000e+00 : f32
    %7 = vector.broadcast %cst_7 : f32 to vector<8x32xf32>
    %8 = vector.extract_strided_slice %5 {offsets = [0, 0], sizes = [8, 32], strides = [1, 1]} : vector<64x32xf32> to vector<8x32xf32>
    %cst_8 = arith.constant dense<0.000000e+00> : vector<8x32xf32>
    %9 = tpu.matmul %7, %6, %cst_8 {dimension_numbers = #tpu.dot_dimension_numbers<[1], [0], [0], [1], [0, 0, 1, 1], [], []>} : vector<8x32xf32>, vector<32x32xf32>, vector<8x32xf32> -> vector<8x32xf32>
    %10 = arith.addf %8, %9 : vector<8x32xf32>
    %11 = math.tanh %10 : vector<8x32xf32>
    %12 = vector.extract_strided_slice %5 {offsets = [8, 0], sizes = [8, 32], strides = [1, 1]} : vector<64x32xf32> to vector<8x32xf32>
    %cst_9 = arith.constant dense<0.000000e+00> : vector<8x32xf32>
    %13 = tpu.matmul %11, %6, %cst_9 {dimension_numbers = #tpu.dot_dimension_numbers<[1], [0], [0], [1], [0, 0, 1, 1], [], []>} : vector<8x32xf32>, vector<32x32xf32>, vector<8x32xf32> -> vector<8x32xf32>
    %14 = arith.addf %12, %13 : vector<8x32xf32>
    %15 = math.tanh %14 : vector<8x32xf32>
    %16 = vector.extract_strided_slice %5 {offsets = [16, 0], sizes = [8, 32], strides = [1, 1]} : vector<64x32xf32> to vector<8x32xf32>
    %cst_10 = arith.constant dense<0.000000e+00> : vector<8x32xf32>
    %17 = tpu.matmul %15, %6, %cst_10 {dimension_numbers = #tpu.dot_dimension_numbers<[1], [0], [0], [1], [0, 0, 1, 1], [], []>} : vector<8x32xf32>, vector<32x32xf32>, vector<8x32xf32> -> vector<8x32xf32>
    %18 = arith.addf %16, %17 : vector<8x32xf32>
    %19 = math.tanh %18 : vector<8x32xf32>
    %20 = vector.extract_strided_slice %5 {offsets = [24, 0], sizes = [8, 32], strides = [1, 1]} : vector<64x32xf32> to vector<8x32xf32>
    %cst_11 = arith.constant dense<0.000000e+00> : vector<8x32xf32>
    %21 = tpu.matmul %19, %6, %cst_11 {dimension_numbers = #tpu.dot_dimension_numbers<[1], [0], [0], [1], [0, 0, 1, 1], [], []>} : vector<8x32xf32>, vector<32x32xf32>, vector<8x32xf32> -> vector<8x32xf32>
    %22 = arith.addf %20, %21 : vector<8x32xf32>
    %23 = math.tanh %22 : vector<8x32xf32>
    %24 = vector.extract_strided_slice %5 {offsets = [32, 0], sizes = [8, 32], strides = [1, 1]} : vector<64x32xf32> to vector<8x32xf32>
    %cst_12 = arith.constant dense<0.000000e+00> : vector<8x32xf32>
    %25 = tpu.matmul %23, %6, %cst_12 {dimension_numbers = #tpu.dot_dimension_numbers<[1], [0], [0], [1], [0, 0, 1, 1], [], []>} : vector<8x32xf32>, vector<32x32xf32>, vector<8x32xf32> -> vector<8x32xf32>
    %26 = arith.addf %24, %25 : vector<8x32xf32>
    %27 = math.tanh %26 : vector<8x32xf32>
    %28 = vector.extract_strided_slice %5 {offsets = [40, 0], sizes = [8, 32], strides = [1, 1]} : vector<64x32xf32> to vector<8x32xf32>
    %cst_13 = arith.constant dense<0.000000e+00> : vector<8x32xf32>
    %29 = tpu.matmul %27, %6, %cst_13 {dimension_numbers = #tpu.dot_dimension_numbers<[1], [0], [0], [1], [0, 0, 1, 1], [], []>} : vector<8x32xf32>, vector<32x32xf32>, vector<8x32xf32> -> vector<8x32xf32>
    %30 = arith.addf %28, %29 : vector<8x32xf32>
    %31 = math.tanh %30 : vector<8x32xf32>
    %32 = vector.extract_strided_slice %5 {offsets = [48, 0], sizes = [8, 32], strides = [1, 1]} : vector<64x32xf32> to vector<8x32xf32>
    %cst_14 = arith.constant dense<0.000000e+00> : vector<8x32xf32>
    %33 = tpu.matmul %31, %6, %cst_14 {dimension_numbers = #tpu.dot_dimension_numbers<[1], [0], [0], [1], [0, 0, 1, 1], [], []>} : vector<8x32xf32>, vector<32x32xf32>, vector<8x32xf32> -> vector<8x32xf32>
    %34 = arith.addf %32, %33 : vector<8x32xf32>
    %35 = math.tanh %34 : vector<8x32xf32>
    %36 = vector.extract_strided_slice %5 {offsets = [56, 0], sizes = [8, 32], strides = [1, 1]} : vector<64x32xf32> to vector<8x32xf32>
    %cst_15 = arith.constant dense<0.000000e+00> : vector<8x32xf32>
    %37 = tpu.matmul %35, %6, %cst_15 {dimension_numbers = #tpu.dot_dimension_numbers<[1], [0], [0], [1], [0, 0, 1, 1], [], []>} : vector<8x32xf32>, vector<32x32xf32>, vector<8x32xf32> -> vector<8x32xf32>
    %38 = arith.addf %36, %37 : vector<8x32xf32>
    %39 = math.tanh %38 : vector<8x32xf32>
    %c0_16 = arith.constant 0 : index
    %c0_17 = arith.constant 0 : index
    %40 = vector.load %arg4[%c0_16, %c0_17] : memref<32x128xf32, #tpu.memory_space<vmem>>, vector<32x128xf32>
    %cst_18 = arith.constant dense<0.000000e+00> : vector<8x128xf32>
    %41 = tpu.matmul %39, %40, %cst_18 {dimension_numbers = #tpu.dot_dimension_numbers<[1], [0], [0], [1], [0, 0, 1, 1], [], []>} : vector<8x32xf32>, vector<32x128xf32>, vector<8x128xf32> -> vector<8x128xf32>
    %c0_19 = arith.constant 0 : index
    %c0_20 = arith.constant 0 : index
    %42 = vector.load %arg5[%c0_19, %c0_20] : memref<1x128xf32, #tpu.memory_space<vmem>>, vector<1x128xf32>
    %43 = vector.broadcast %42 : vector<1x128xf32> to vector<8x128xf32>
    %44 = arith.addf %41, %43 : vector<8x128xf32>
    %cst_21 = arith.constant dense<0xFF800000> : vector<8xf32>
    %45 = vector.multi_reduction <maximumf>, %44, %cst_21 [1] : vector<8x128xf32> to vector<8xf32>
    %46 = vector.shape_cast %45 : vector<8xf32> to vector<8x1xf32>
    %47 = vector.broadcast %46 : vector<8x1xf32> to vector<8x128xf32>
    %48 = arith.subf %44, %47 : vector<8x128xf32>
    %49 = math.exp %48 : vector<8x128xf32>
    %cst_22 = arith.constant dense<0.000000e+00> : vector<8xf32>
    %50 = vector.multi_reduction <add>, %49, %cst_22 [1] : vector<8x128xf32> to vector<8xf32>
    %51 = vector.shape_cast %50 : vector<8xf32> to vector<8x1xf32>
    %52 = math.log %51 : vector<8x1xf32>
    %53 = vector.broadcast %52 : vector<8x1xf32> to vector<8x128xf32>
    %54 = arith.subf %48, %53 : vector<8x128xf32>
    %c0_23 = arith.constant 0 : index
    %c0_24 = arith.constant 0 : index
    %55 = vector.load %arg6[%c0_23, %c0_24] : memref<8x128xf32, #tpu.memory_space<vmem>>, vector<8x128xf32>
    tpu.vector_store %arg6[%c0_23, %c0_24], %54 {strides = array<i32>} : memref<8x128xf32, #tpu.memory_space<vmem>>, vector<8x128xf32>,
    return
  }
}

</mosaic_0001>

<bundles_post_ra>
// kernel: _rnn_forward_jit.1
= control target key start
LH: loop header
LB: loop body
LE: loop exit
PB: predicated region body
PF: predicated region fallthrough
CT: control target
= control target key end

     0   :  { %vm40_vm0 = vcmask 130048   ;;  %v1143_v0 = vmov 0.0|0.0   ;;  %vm1144_vm1 = vmmov 0   ;;  %v1145_v4 = vmov 0.0   ;;  %s1327_s1 = inlined_call_operand.vmem [shape: f32[16,32], index: 1, kind: input, shape index: {}]   ;;  %s1328_s2 = inlined_call_operand.vmem [shape: f32[32,32], index: 2, kind: input, shape index: {}]   ;;  %s1329_s0 = inlined_call_operand.vmem [shape: f32[64,16], index: 0, kind: input, shape index: {}]   ;;  %s1330_s3 = inlined_call_operand.vmem [shape: f32[1,32], index: 3, kind: input, shape index: {}]   ;;  %s1331_s4 = inlined_call_operand.vmem [shape: f32[32,128], index: 4, kind: input, shape index: {}]   ;;  %s1332_s5 = inlined_call_operand.vmem [shape: f32[1,128], index: 5, kind: input, shape index: {}]   ;;  %s1333_s6 = inlined_call_operand.vmem [shape: f32[8,128], index: 6, kind: output, shape index: {}]  }
   0x1   :  { %1066 = vmatprep.subr.bf16.mxu1 %v1143_v0  ;;  %v31_v1 = vld [vmem:[%s1327_s1] sm:$0xff]  ;;  %v32_v2 = vld [vmem:[%s1327_s1 + $0x8] sm:$0xff]  ;;  %971 = vmatprep.mubr.msk.f32.mxu1 %vm1144_vm1, %v1145_v4  ;;  %v172_v9 = vld [vmem:[%s1328_s2 + $0x10] sm:$0xff]  ;;  %vm174_vm2 = vcmask 261120  }
   0x2   :  { %v170_v3 = vld [vmem:[%s1328_s2] sm:$0xff]  ;;  %v1062_v5 = vpack.c.bf16 %v32_v2, %v31_v1  ;;  %v171_v6 = vld [vmem:[%s1328_s2 + $0x8] sm:$0xff]  ;;  %v173_v10 = vld [vmem:[%s1328_s2 + $0x18] sm:$0xff] }
   0x3   :  { %v23_v7 = vld [vmem:[%s1329_s0] sm:$0xff]  ;;  %v1199_v8 = vpack.c.bf16 %v171_v6, %v170_v3  ;;  %v24_v11 = vld [vmem:[%s1329_s0 + $0x8] sm:$0xff]  ;;  %v1212_v12 = vpack.c.bf16 %v173_v10, %v172_v9  ;;  %v25_v13 = vld [vmem:[%s1329_s0 + $0x10] sm:$0xff] }
   0x4   :  { %951 = vmatprep.mubr.msk.f32.mxu0 %vm40_vm0, %v23_v7  ;;  %1063 = vmatprep.subr.bf16.mxu0 %v1062_v5  ;;  %v1237_v14 = vld [vmem:[%s1330_s3] ss:$0 sm:$0xff]  ;;  %v26_v22 = vld [vmem:[%s1329_s0 + $0x18] sm:$0xff]  ;;  %v28_v24 = vld [vmem:[%s1329_s0 + $0x28] sm:$0xff] }
   0x5   :  { %1068 = vmatpush3.bf16.msra.mxu1 %v1199_v8  ;;  %1065 = vmatpush3.bf16.msra.mxu0 %v1062_v5  ;;  %v27_v23 = vld [vmem:[%s1329_s0 + $0x20] sm:$0xff]  ;;  %v29_v25 = vld [vmem:[%s1329_s0 + $0x30] sm:$0xff]  ;;  %v30_v26 = vld [vmem:[%s1329_s0 + $0x38] sm:$0xff] }
   0x6   :  { %1069 = vmatprep.subr.bf16.mxu1 %v1143_v0  ;;  %1078 = vmatprep.subr.bf16.mxu0 %v1143_v0  ;;  %v775_v63 = vld [vmem:[%s1331_s4] sm:$0xff]  ;;  %v776_v1 = vld [vmem:[%s1331_s4 + $0x8] sm:$0xff]  ;;  %v777_v2 = vld [vmem:[%s1331_s4 + $0x10] sm:$0xff] }
   0x7   :  { %v1115_v3 = vpack.c.bf16 %v776_v1, %v775_v63 }
   0x8   :  { %952 = vmatmul.mubr.msk.f32.vlgmr.msra.gmra.mrb[0].mxu0 %vm40_vm0, %v24_v11  ;;  %v890_v11 = vld [vmem:[%s1332_s5] ss:$0 sm:$0xff] }
   0x9   :  { %1071 = vmatpush3.bf16.msra.mxu1 %v1212_v12  ;;  %1080 = vmatpush3.bf16.msra.mxu0 %v1199_v8 }
   0xa   :  { %1072 = vmatprep.subr.bf16.mxu1 %v1143_v0  ;;  %1081 = vmatprep.subr.bf16.mxu0 %v1143_v0 }
   0xb   :  { %954 = vmatprep.mubr.msk.f32.mxu0 %vm40_vm0, %v25_v13 }
   0xc   :  { %972 = vmatmul.mubr.f32.vlgmr.msra.gmra.mrb[0].mxu1 %v1145_v4  ;;  %955 = vmatmul.mubr.msk.f32.gmra.mrb[2].mxu0 %vm40_vm0, %v26_v22 }
   0xd   :  { %1074 = vmatpush3.bf16.msra.mxu1 %v1199_v8  ;;  %982 = vmatprep.mubr.msk.f32.mxu1 %vm1144_vm1, %v1145_v4 }
   0xe   :  { %1075 = vmatprep.subr.bf16.mxu1 %v1143_v0  ;;  %1083 = vmatpush3.bf16.msra.mxu0 %v1212_v12 }
   0xf   :  { %1090 = vmatprep.subr.bf16.mxu0 %v1143_v0  ;;  %957 = vmatprep.mubr.msk.f32.mxu0 %vm40_vm0, %v27_v23 }
  0x10   :  { %958 = vmatmul.mubr.msk.f32.gmra.mrb[4].mxu0 %vm40_vm0, %v28_v24 }
  0x11   :  { %1077 = vmatpush3.bf16.msra.mxu1 %v1212_v12  ;;  %960 = vmatprep.mubr.msk.f32.mxu0 %vm40_vm0, %v29_v25 }
  0x12   :  { %1084 = vmatprep.subr.bf16.mxu1 %v1143_v0 }
  0x14   :  { %961 = vmatmul.mubr.msk.f32.gmra.mrb[6].mxu0 %vm40_vm0, %v30_v26 }
  0x15   :  { %993 = vmatprep.mubr.msk.f32.mxu0 %vm1144_vm1, %v1145_v4 }
  0xdb   :  { %v953_v15 = vpop.f32.mrb[0].mxu0 }
  0xdc   :  { %v131_v16 = vpop.f32.mrb[1].mxu0  ;;  %v137_v27 = vadd.f32 %v953_v15, %v1237_v14 }
  0xdd   :  { %v132_v17 = vadd.f32 %v1237_v14, %v131_v16 }
  0xdf   :  { %v244_v18 = vpop.f32.mrb[0].mxu1  ;;  %v956_v32 = vpop.f32.mrb[2].mxu0 }
  0xe0   :  { %v248_v19 = vadd.f32 %v244_v18, %v132_v17  ;;  %v973_v20 = vpop.f32.mrb[1].mxu1  ;;  %v141_v33 = vpop.f32.mrb[3].mxu0  ;;  %v147_v43 = vadd.f32 %v956_v32, %v1237_v14 }
  0xe1   :  { %v142_v38 = vadd.f32 %v1237_v14, %v141_v33 }
  0xe2   :  { %1123 = vtanh.f32 %v248_v19 }
  0xe3   :  { %v959_v34 = vpop.f32.mrb[4].mxu0 }
  0xe4   :  { %v151_v35 = vpop.f32.mrb[5].mxu0  ;;  %v157_v53 = vadd.f32 %v959_v34, %v1237_v14 }
  0xe5   :  { %v152_v48 = vadd.f32 %v1237_v14, %v151_v35 }
  0xe7   :  { %v962_v36 = vpop.f32.mrb[6].mxu0 }
  0xe8   :  { %v161_v37 = vpop.f32.mrb[7].mxu0  ;;  %v167_v6 = vadd.f32 %v962_v36, %v1237_v14 }
  0xe9   :  { %v162_v58 = vadd.f32 %v1237_v14, %v161_v37 }
  0xec   :  { %v1124_v21 = vpop.eup %1123 }
  0xed   :  { %983 = vmatmul.mubr.msk.f32.vlgmr.msra.gmra.mrb[2].mxu1 %vm174_vm2, %v1124_v21 }
  0xee   :  { %1086 = vmatpush3.bf16.msra.mxu1 %v1199_v8  ;;  %1004 = vmatprep.mubr.msk.f32.mxu1 %vm1144_vm1, %v1145_v4 }
  0xef   :  { %1087 = vmatprep.subr.bf16.mxu1 %v1143_v0 }
  0xf2   :  { %1089 = vmatpush3.bf16.msra.mxu1 %v1212_v12 }
  0xf3   :  { %1096 = vmatprep.subr.bf16.mxu1 %v1143_v0 }
 0x1c0   :  { %v319_v28 = vpop.f32.mrb[2].mxu1 }
 0x1c1   :  { %v323_v29 = vadd.f32 %v319_v28, %v137_v27  ;;  %v984_v30 = vpop.f32.mrb[3].mxu1 }
 0x1c3   :  { %1125 = vtanh.f32 %v323_v29 }
 0x1cd   :  { %v1126_v31 = vpop.eup %1125 }
 0x1ce   :  { %994 = vmatmul.mubr.msk.f32.vlgmr.msra.gmra.mrb[8].mxu0 %vm174_vm2, %v1126_v31 }
 0x1cf   :  { %1092 = vmatpush3.bf16.msra.mxu0 %v1199_v8  ;;  %1015 = vmatprep.mubr.msk.f32.mxu0 %vm1144_vm1, %v1145_v4 }
 0x1d0   :  { %1093 = vmatprep.subr.bf16.mxu0 %v1143_v0 }
 0x1d3   :  { %1095 = vmatpush3.bf16.msra.mxu0 %v1212_v12 }
 0x1d4   :  { %1102 = vmatprep.subr.bf16.mxu0 %v1143_v0 }
 0x2a1   :  { %v394_v39 = vpop.f32.mrb[8].mxu0 }
 0x2a2   :  { %v398_v40 = vadd.f32 %v394_v39, %v142_v38  ;;  %v995_v41 = vpop.f32.mrb[9].mxu0 }
 0x2a4   :  { %1127 = vtanh.f32 %v398_v40 }
 0x2ae   :  { %v1128_v42 = vpop.eup %1127 }
 0x2af   :  { %1005 = vmatmul.mubr.msk.f32.vlgmr.msra.gmra.mrb[4].mxu1 %vm174_vm2, %v1128_v42 }
 0x2b0   :  { %1098 = vmatpush3.bf16.msra.mxu1 %v1199_v8  ;;  %1026 = vmatprep.mubr.msk.f32.mxu1 %vm1144_vm1, %v1145_v4 }
 0x2b1   :  { %1099 = vmatprep.subr.bf16.mxu1 %v1143_v0 }
 0x2b4   :  { %1101 = vmatpush3.bf16.msra.mxu1 %v1212_v12 }
 0x2b5   :  { %1108 = vmatprep.subr.bf16.mxu1 %v1143_v0 }
 0x382   :  { %v469_v44 = vpop.f32.mrb[4].mxu1 }
 0x383   :  { %v473_v45 = vadd.f32 %v469_v44, %v147_v43  ;;  %v1006_v46 = vpop.f32.mrb[5].mxu1 }
 0x385   :  { %1129 = vtanh.f32 %v473_v45 }
 0x38f   :  { %v1130_v47 = vpop.eup %1129 }
 0x390   :  { %1016 = vmatmul.mubr.msk.f32.vlgmr.msra.gmra.mrb[10].mxu0 %vm174_vm2, %v1130_v47 }
 0x391   :  { %1104 = vmatpush3.bf16.msra.mxu0 %v1199_v8  ;;  %1037 = vmatprep.mubr.msk.f32.mxu0 %vm1144_vm1, %v1145_v4 }
 0x392   :  { %1105 = vmatprep.subr.bf16.mxu0 %v1143_v0 }
 0x395   :  { %1107 = vmatpush3.bf16.msra.mxu0 %v1212_v12 }
 0x396   :  { %1114 = vmatprep.subr.bf16.mxu0 %v1143_v0 }
 0x463   :  { %v544_v49 = vpop.f32.mrb[10].mxu0 }
 0x464   :  { %v548_v50 = vadd.f32 %v544_v49, %v152_v48  ;;  %v1017_v51 = vpop.f32.mrb[11].mxu0 }
 0x466   :  { %1131 = vtanh.f32 %v548_v50 }
 0x470   :  { %v1132_v52 = vpop.eup %1131 }
 0x471   :  { %1027 = vmatmul.mubr.msk.f32.vlgmr.msra.gmra.mrb[6].mxu1 %vm174_vm2, %v1132_v52 }
 0x472   :  { %1110 = vmatpush3.bf16.msra.mxu1 %v1199_v8  ;;  %1048 = vmatprep.mubr.msk.f32.mxu1 %vm1144_vm1, %v1145_v4 }
 0x473   :  { %1111 = vmatprep.subr.bf16.mxu1 %v1143_v0 }
 0x476   :  { %1113 = vmatpush3.bf16.msra.mxu1 %v1212_v12 }
 0x544   :  { %v619_v54 = vpop.f32.mrb[6].mxu1 }
 0x545   :  { %v623_v55 = vadd.f32 %v619_v54, %v157_v53  ;;  %v1028_v56 = vpop.f32.mrb[7].mxu1 }
 0x547   :  { %1133 = vtanh.f32 %v623_v55 }
 0x551   :  { %v1134_v57 = vpop.eup %1133 }
 0x552   :  { %1038 = vmatmul.mubr.msk.f32.vlgmr.msra.gmra.mrb[12].mxu0 %vm174_vm2, %v1134_v57 }
 0x553   :  { %1059 = vmatprep.mubr.msk.f32.mxu0 %vm1144_vm1, %v1145_v4  ;;  %v778_v4 = vld [vmem:[%s1331_s4 + $0x18] sm:$0xff]  ;;  %1116 = vmatpush3.bf16.msra.mxu0 %v1115_v3 }
 0x554   :  { %v1118_v5 = vpack.c.bf16 %v778_v4, %v777_v2  ;;  %1117 = vmatprep.subr.bf16.mxu0 %v1143_v0 }
 0x557   :  { %1119 = vmatpush3.bf16.msra.mxu0 %v1118_v5 }
 0x625   :  { %v694_v59 = vpop.f32.mrb[12].mxu0 }
 0x626   :  { %v698_v60 = vadd.f32 %v694_v59, %v162_v58  ;;  %v1039_v61 = vpop.f32.mrb[13].mxu0 }
 0x628   :  { %1135 = vtanh.f32 %v698_v60 }
 0x632   :  { %v1136_v62 = vpop.eup %1135 }
 0x633   :  { %1049 = vmatmul.mubr.msk.f32.vlgmr.msra.gmra.mrb[8].mxu1 %vm174_vm2, %v1136_v62 }
 0x706   :  { %v769_v7 = vpop.f32.mrb[8].mxu1 }
 0x707   :  { %v773_v8 = vadd.f32 %v769_v7, %v167_v6  ;;  %v1050_v9 = vpop.f32.mrb[9].mxu1 }
 0x709   :  { %1137 = vtanh.f32 %v773_v8 }
 0x713   :  { %v1138_v10 = vpop.eup %1137 }
 0x714   :  { %1060 = vmatmul.mubr.msk.f32.vlgmr.msra.gmra.mrb[14].mxu0 %vm174_vm2, %v1138_v10 }
 0x7e7   :  { %v855_v12 = vpop.f32.mrb[14].mxu0 }
 0x7e8   :  { %v856_v13 = vadd.f32 %v890_v11, %v855_v12  ;;  %v1061_v15 = vpop.f32.mrb[15].mxu0 }
 0x7ea   :  { %859 = vmax.xlane.f32.xlu0 %v856_v13 }
 0x877   :  { %v860_v16 = vpop.xlane.xlu0 %859 }
 0x878   :  { %v861_v0 = vsub.f32 %v856_v13, %v860_v16 }
 0x87a   :  { %v862_v17 = vmul.f32 1.442695, %v861_v0 }
 0x87c   :  { %1139 = vpow2.f32 %v862_v17 }
 0x886   :  { %v1140_v14 = vpop.eup %1139 }
 0x887   :  { %864 = vadd.xlane.f32.xlu0 %v1140_v14 }
 0x914   :  { %v865_v18 = vpop.xlane.xlu0 %864 }
 0x915   :  { %1141 = vlog2.f32 %v865_v18 }
 0x91f   :  { %v1142_v19 = vpop.eup %1141 }
 0x920   :  { %v867_v20 = vmul.f32 0.6931472, %v1142_v19 }
 0x922   :  { %v868_v21 = vsub.f32 %v861_v0, %v867_v20 }
 0x924   :  { %869 = vst [vmem:[%s1333_s6] sm:$0xff] %v868_v21 }

</bundles_post_ra>
